<compile_context>
chip_gen: v6e
topology: v6e:2x2x1
jax: 0.10.0
libtpu: 0.0.40
codegen_flags: <defaults>
</compile_context>

<pallas_src>
import math
import functools

import jax
import jax.numpy as jnp
from jax.experimental import pallas as pl
from jax.experimental.pallas import tpu as pltpu


def _mha_kernel(q_ref, k_ref, v_ref, mask_ref,
                wq_ref, bq_ref, wk_ref, bk_ref, wv_ref, bv_ref,
                wo_ref, bo_ref, o_ref, ctx_ref, *, h, d_k):
    BB, Lq, D = q_ref.shape
    Lk = k_ref.shape[1]
    cdt = wq_ref.dtype                      # MXU operand dtype (bf16 by default)

    # Flatten (BB, L, D) -> (BB*L, D) so each projection is one large MXU matmul.
    q2 = q_ref[...].reshape(BB * Lq, D)
    k2 = k_ref[...].reshape(BB * Lk, D)
    v2 = v_ref[...].reshape(BB * Lk, D)

    # ---- Fused projections: ONE matmul per Q/K/V over ALL heads (N = h*d_k). ----
    Q = jnp.dot(q2, wq_ref[...], preferred_element_type=jnp.float32) + bq_ref[...]
    K = jnp.dot(k2, wk_ref[...], preferred_element_type=jnp.float32) + bk_ref[...]
    V = jnp.dot(v2, wv_ref[...], preferred_element_type=jnp.float32) + bv_ref[...]
    Q = Q * jnp.float32(1.0 / math.sqrt(d_k))          # scale Q once, not the scores

    # ---- Mask as an additive bias, computed ONCE per grid step (not per head). ----
    # mask_ref is (BB, Mq, Lk) with Mq in {1, Lq}; broadcasts over the query axis below.
    bias = jnp.where(mask_ref[...] > 0, jnp.float32(0.0), jnp.float32(-1e9))

    # ---- Attention core: small static head loop (h is tiny & static). ----
    # A head-batched dot_general lowers to identical per-head MXU ops on TPU, so this
    # loop costs no MXU throughput; per-head work is only the score/context matmuls plus
    # a static lane slice of the already-fused projections.
    for hd in range(h):
        sl = slice(hd * d_k, (hd + 1) * d_k)           # static lane slice
        Qh = Q[:, sl].reshape(BB, Lq, d_k).astype(cdt)
        Kh = K[:, sl].reshape(BB, Lk, d_k).astype(cdt)
        Vh = V[:, sl].reshape(BB, Lk, d_k).astype(cdt)

        s = jnp.einsum("bqd,bkd->bqk", Qh, Kh,
                       preferred_element_type=jnp.float32)        # (BB, Lq, Lk) f32
        s = s + bias                                               # additive mask

        # Softmax over keys (kept in f32); reciprocal on the (otherwise idle) EUP.
        smax = jnp.max(s, axis=-1, keepdims=True)
        p = jnp.exp(s - smax)
        p = p * pl.reciprocal(jnp.sum(p, axis=-1, keepdims=True), approx=True)

        ctx = jnp.einsum("bqk,bkd->bqd", p.astype(cdt), Vh,
                         preferred_element_type=jnp.float32)       # (BB, Lq, d_k) f32
        # Stage per-head context into the lane-concatenated slab (VMEM scratch).
        ctx_ref[:, sl] = ctx.reshape(BB * Lq, d_k)

    # ---- ONE output-projection matmul with K = h*d_k (replaces h K=d_k matmuls). ----
    y = jnp.dot(ctx_ref[...].astype(cdt), wo_ref[...],
                preferred_element_type=jnp.float32) + bo_ref[...]  # (BB*Lq, D) f32

    # NOTE: D=32 (<128 lanes) makes this a lane-masked store; for production shapes keep
    # D a multiple of 128 so the store is lane-dense.  Folding Lq into the lane dim here
    # would require a sublane->lane relayout of the matmul result, so it is not done.
    o_ref[...] = y.reshape(BB, Lq, D).astype(o_ref.dtype)

    # TODO(synk): dropout on the attention probabilities is omitted (eval-mode
    # semantics); training parity would need pltpu.prng_seed/prng_random_bits.
    # TODO(synk): for non-toy Lk, add an Lk grid axis ("arbitrary") with online-softmax
    # running max/denominator in VMEM scratch instead of materializing (BB, Lq, Lk).


def multi_headed_dot_attention(query, key, value, params, *, h, mask=None,
                               block_b=8, mxu_dtype=jnp.bfloat16):
    """query: (B, Lq, D) or (B, D); key/value: (B, Lk, D); mask: None, (B, Lk) or (B, Lq, Lk).

    mxu_dtype: dtype of MXU operands (activations / weights / probs); bf16 is the
    v6e/v7x-peak default (f32 accumulation).  Pass None for exact f32 MXU inputs.
    """
    single_query = (query.ndim == 2)
    if single_query:
        query = query[:, None, :]

    out_dtype = query.dtype
    B, Lq, D = query.shape
    Lk = key.shape[1]
    Ds = params["wq"].shape[1]          # d_model * scale
    d_k = Ds // h

    # Mask normalized to (B, Mq, Lk); the query-axis broadcast happens inside the kernel.
    if mask is None:
        mask_arr = jnp.ones((B, 1, Lk), jnp.float32)
    else:
        mask_arr = jnp.asarray(mask, jnp.float32)
        if mask_arr.ndim == 2:           # (B, Lk) -> (B, 1, Lk)  (== mask.unsqueeze(-2))
            mask_arr = mask_arr[:, None, :]
    Mq = mask_arr.shape[1]

    # Cast MXU operands once in the wrapper (halves weight/activation DMA + VMEM).
    if mxu_dtype is not None:
        query, key, value = (x.astype(mxu_dtype) for x in (query, key, value))
        wq, wk, wv, wo = (params[n].astype(mxu_dtype) for n in ("wq", "wk", "wv", "wo"))
    else:
        wq, wk, wv, wo = params["wq"], params["wk"], params["wv"], params["wo"]
    bq = params["bq"].reshape(1, Ds).astype(jnp.float32)
    bk = params["bk"].reshape(1, Ds).astype(jnp.float32)
    bv = params["bv"].reshape(1, Ds).astype(jnp.float32)
    bo = params["bo"].reshape(1, D).astype(jnp.float32)

    # Batch blocking: BB elements per grid step, but always >= 2 grid steps when B >= 2
    # so the "parallel" batch axis can shard across v7x's two TensorCores.
    BB = max(1, min(block_b, pl.cdiv(B, 2)))
    nb = pl.cdiv(B, BB)
    Bp = nb * BB
    if Bp != B:
        pad = Bp - B
        query = jnp.pad(query, ((0, pad), (0, 0), (0, 0)))
        key = jnp.pad(key, ((0, pad), (0, 0), (0, 0)))
        value = jnp.pad(value, ((0, pad), (0, 0), (0, 0)))
        mask_arr = jnp.pad(mask_arr, ((0, pad), (0, 0), (0, 0)), constant_values=1.0)

    kernel = functools.partial(_mha_kernel, h=h, d_k=d_k)

    batch_spec = lambda L, C: pl.BlockSpec((BB, L, C), lambda b: (b, 0, 0))
    # Constant index_map -> weights are DMA'd once and kept resident across grid steps.
    const_spec = lambda shp: pl.BlockSpec(shp, lambda b: (0,) * len(shp))

    out = pl.pallas_call(
        kernel,
        out_shape=jax.ShapeDtypeStruct((Bp, Lq, D), out_dtype),
        grid_spec=pltpu.PrefetchScalarGridSpec(
            num_scalar_prefetch=0,
            grid=(nb,),
            in_specs=[
                batch_spec(Lq, D),                          # query
                batch_spec(Lk, D),                          # key
                batch_spec(Lk, D),                          # value
                batch_spec(Mq, Lk),                         # mask (no Lq broadcast)
                const_spec((D, Ds)), const_spec((1, Ds)),   # Wq, bq  (fused over heads)
                const_spec((D, Ds)), const_spec((1, Ds)),   # Wk, bk
                const_spec((D, Ds)), const_spec((1, Ds)),   # Wv, bv
                const_spec((Ds, D)), const_spec((1, D)),    # Wo, bo
            ],
            out_specs=pl.BlockSpec((BB, Lq, D), lambda b: (b, 0, 0)),
            # Lane-concatenated per-head context, consumed by the single output matmul.
            scratch_shapes=[pltpu.VMEM((BB * Lq, Ds), jnp.float32)],
        ),
        compiler_params=pltpu.CompilerParams(
            # Batch steps are independent -> sharded across the 2 TCs on v7x.
            dimension_semantics=("parallel",),
            # Explicit VMEM budget (raises v5e's 16 MiB default; fits v7x's 64 MiB).
            # Raise further when using larger BB / Lq blocks at production shapes.
            vmem_limit_bytes=32 * 1024 * 1024,
        ),
    )(query, key, value, mask_arr, wq, bq, wk, bk, wv, bv, wo, bo)

    out = out[:B]
    if single_query:
        out = out[:, 0, :]
    return out


def _reference(query, key, value, params, *, h, mask=None):
    """Pure-JAX mirror of the PyTorch forward (eval mode)."""
    B, Lq, D = query.shape
    Lk = key.shape[1]
    Ds = params["wq"].shape[1]
    d_k = Ds // h

    def lin(x, w, b):
        return x @ w + b[0]

    def split_heads(x, L):
        return x.reshape(B, L, h, d_k).transpose(0, 2, 1, 3)   # (B, h, L, d_k)

    Q = split_heads(lin(query, params["wq"], params["bq"]), Lq)
    K = split_heads(lin(key, params["wk"], params["bk"]), Lk)
    V = split_heads(lin(value, params["wv"], params["bv"]), Lk)

    scores = jnp.einsum("bhqd,bhkd->bhqk", Q, K) / math.sqrt(d_k)
    if mask is not None:
        m = jnp.asarray(mask, jnp.float32)
        if m.ndim == 2:
            m = m[:, None, :]
        scores = jnp.where(m[:, None, :, :] > 0, scores, -1e9)
    p = jax.nn.softmax(scores, axis=-1)
    ctx = jnp.einsum("bhqk,bhkd->bhqd", p, V)
    ctx = ctx.transpose(0, 2, 1, 3).reshape(B, Lq, h * d_k)
    return lin(ctx, params["wo"], params["bo"])


if __name__ == "__main__":
    # Module hyperparameters
    h = 4
    d_model = 32
    scale = 1
    d_s = d_model * scale

    # Small example shapes
    B, Lq, Lk = 2, 8, 8

    key0 = jax.random.PRNGKey(0)
    ks = jax.random.split(key0, 12)

    # Weights stored as (in, out) => x @ W + b  ==  PyTorch x @ W_pt^T + b
    params = {
        "wq": jax.random.normal(ks[0], (d_model, d_s), jnp.float32) * 0.1,
        "bq": jax.random.normal(ks[1], (1, d_s), jnp.float32) * 0.01,
        "wk": jax.random.normal(ks[2], (d_model, d_s), jnp.float32) * 0.1,
        "bk": jax.random.normal(ks[3], (1, d_s), jnp.float32) * 0.01,
        "wv": jax.random.normal(ks[4], (d_model, d_s), jnp.float32) * 0.1,
        "bv": jax.random.normal(ks[5], (1, d_s), jnp.float32) * 0.01,
        "wo": jax.random.normal(ks[6], (d_s, d_model), jnp.float32) * 0.1,
        "bo": jax.random.normal(ks[7], (1, d_model), jnp.float32) * 0.01,
    }

    query = jax.random.normal(ks[8], (B, Lq, d_model), jnp.float32)
    keyt = jax.random.normal(ks[9], (B, Lk, d_model), jnp.float32)
    value = jax.random.normal(ks[10], (B, Lk, d_model), jnp.float32)
    # 2-D mask (B, Lk) like the PyTorch path mask.unsqueeze(-2)
    mask = (jax.random.uniform(ks[11], (B, Lk)) > 0.2).astype(jnp.float32)

    ref = _reference(query, keyt, value, params, h=h, mask=mask)

    # Default path: bf16 MXU operands (v6e/v7x MXU peak), f32 accumulation.
    out_bf16 = multi_headed_dot_attention(query, keyt, value, params, h=h, mask=mask)
    out_bf16 = jax.block_until_ready(out_bf16)
    assert out_bf16.shape == (B, Lq, d_model)
    err_bf16 = float(jnp.max(jnp.abs(out_bf16 - ref)))
    assert jnp.allclose(out_bf16, ref, atol=5e-2, rtol=5e-2), err_bf16

    # Exact-f32 MXU-operand path: tight tolerance (only the approx EUP reciprocal left).
    out_f32 = multi_headed_dot_attention(query, keyt, value, params, h=h, mask=mask,
                                         mxu_dtype=None)
    out_f32 = jax.block_until_ready(out_f32)
    err_f32 = float(jnp.max(jnp.abs(out_f32 - ref)))
    assert jnp.allclose(out_f32, ref, atol=2e-3, rtol=2e-3), err_f32

    print("KERNEL_OK")
</pallas_src>

<mosaic_0001>
module attributes {stable_mosaic.version = 11 : i64} {
  func.func @_mha_kernel(%arg0: i32, %arg1: memref<1x8x32xbf16, #tpu.memory_space<vmem>>, %arg2: memref<1x8x32xbf16, #tpu.memory_space<vmem>>, %arg3: memref<1x8x32xbf16, #tpu.memory_space<vmem>>, %arg4: memref<1x1x8xf32, #tpu.memory_space<vmem>>, %arg5: memref<32x32xbf16, #tpu.memory_space<vmem>>, %arg6: memref<1x32xf32, #tpu.memory_space<vmem>>, %arg7: memref<32x32xbf16, #tpu.memory_space<vmem>>, %arg8: memref<1x32xf32, #tpu.memory_space<vmem>>, %arg9: memref<32x32xbf16, #tpu.memory_space<vmem>>, %arg10: memref<1x32xf32, #tpu.memory_space<vmem>>, %arg11: memref<32x32xbf16, #tpu.memory_space<vmem>>, %arg12: memref<1x32xf32, #tpu.memory_space<vmem>>, %arg13: memref<1x8x32xf32, #tpu.memory_space<vmem>>, %arg14: memref<8x32xf32, #tpu.memory_space<vmem>>) attributes {dimension_semantics = [#tpu.dimension_semantics<parallel>], iteration_bounds = array<i64: 2>, scalar_prefetch = 0 : i64, scratch_operands = 1 : i64, tpu.core_type = #tpu.core_type<tc>, window_params = [{transform_indices = @transform_0, window_bounds = array<i64: 1, 8, 32>}, {transform_indices = @transform_1, window_bounds = array<i64: 1, 8, 32>}, {transform_indices = @transform_2, window_bounds = array<i64: 1, 8, 32>}, {transform_indices = @transform_3, window_bounds = array<i64: 1, 1, 8>}, {pipeline_mode = #tpu.pipeline_mode<synchronous>, transform_indices = @transform_4, window_bounds = array<i64: 32, 32>}, {pipeline_mode = #tpu.pipeline_mode<synchronous>, transform_indices = @transform_5, window_bounds = array<i64: 1, 32>}, {pipeline_mode = #tpu.pipeline_mode<synchronous>, transform_indices = @transform_6, window_bounds = array<i64: 32, 32>}, {pipeline_mode = #tpu.pipeline_mode<synchronous>, transform_indices = @transform_7, window_bounds = array<i64: 1, 32>}, {pipeline_mode = #tpu.pipeline_mode<synchronous>, transform_indices = @transform_8, window_bounds = array<i64: 32, 32>}, {pipeline_mode = #tpu.pipeline_mode<synchronous>, transform_indices = @transform_9, window_bounds = array<i64: 1, 32>}, {pipeline_mode = #tpu.pipeline_mode<synchronous>, transform_indices = @transform_10, window_bounds = array<i64: 32, 32>}, {pipeline_mode = #tpu.pipeline_mode<synchronous>, transform_indices = @transform_11, window_bounds = array<i64: 1, 32>}, {transform_indices = @transform_12, window_bounds = array<i64: 1, 8, 32>}]} {
    %c0 = arith.constant 0 : index
    %c0_0 = arith.constant 0 : index
    %c0_1 = arith.constant 0 : index
    %0 = vector.load %arg1[%c0, %c0_0, %c0_1] : memref<1x8x32xbf16, #tpu.memory_space<vmem>>, vector<1x8x32xbf16>
    %1 = vector.shape_cast %0 : vector<1x8x32xbf16> to vector<8x32xbf16>
    %c0_2 = arith.constant 0 : index
    %c0_3 = arith.constant 0 : index
    %c0_4 = arith.constant 0 : index
    %2 = vector.load %arg2[%c0_2, %c0_3, %c0_4] : memref<1x8x32xbf16, #tpu.memory_space<vmem>>, vector<1x8x32xbf16>
    %3 = vector.shape_cast %2 : vector<1x8x32xbf16> to vector<8x32xbf16>
    %c0_5 = arith.constant 0 : index
    %c0_6 = arith.constant 0 : index
    %c0_7 = arith.constant 0 : index
    %4 = vector.load %arg3[%c0_5, %c0_6, %c0_7] : memref<1x8x32xbf16, #tpu.memory_space<vmem>>, vector<1x8x32xbf16>
    %5 = vector.shape_cast %4 : vector<1x8x32xbf16> to vector<8x32xbf16>
    %c0_8 = arith.constant 0 : index
    %c0_9 = arith.constant 0 : index
    %6 = vector.load %arg5[%c0_8, %c0_9] : memref<32x32xbf16, #tpu.memory_space<vmem>>, vector<32x32xbf16>
    %cst = arith.constant dense<0.000000e+00> : vector<8x32xf32>
    %7 = tpu.matmul %1, %6, %cst {dimension_numbers = #tpu.dot_dimension_numbers<[1], [0], [0], [1], [0, 0, 1, 1], [], []>} : vector<8x32xbf16>, vector<32x32xbf16>, vector<8x32xf32> -> vector<8x32xf32>
    %c0_10 = arith.constant 0 : index
    %c0_11 = arith.constant 0 : index
    %8 = vector.load %arg6[%c0_10, %c0_11] : memref<1x32xf32, #tpu.memory_space<vmem>>, vector<1x32xf32>
    %9 = vector.broadcast %8 : vector<1x32xf32> to vector<8x32xf32>
    %10 = arith.addf %7, %9 : vector<8x32xf32>
    %c0_12 = arith.constant 0 : index
    %c0_13 = arith.constant 0 : index
    %11 = vector.load %arg7[%c0_12, %c0_13] : memref<32x32xbf16, #tpu.memory_space<vmem>>, vector<32x32xbf16>
    %cst_14 = arith.constant dense<0.000000e+00> : vector<8x32xf32>
    %12 = tpu.matmul %3, %11, %cst_14 {dimension_numbers = #tpu.dot_dimension_numbers<[1], [0], [0], [1], [0, 0, 1, 1], [], []>} : vector<8x32xbf16>, vector<32x32xbf16>, vector<8x32xf32> -> vector<8x32xf32>
    %c0_15 = arith.constant 0 : index
    %c0_16 = arith.constant 0 : index
    %13 = vector.load %arg8[%c0_15, %c0_16] : memref<1x32xf32, #tpu.memory_space<vmem>>, vector<1x32xf32>
    %14 = vector.broadcast %13 : vector<1x32xf32> to vector<8x32xf32>
    %15 = arith.addf %12, %14 : vector<8x32xf32>
    %c0_17 = arith.constant 0 : index
    %c0_18 = arith.constant 0 : index
    %16 = vector.load %arg9[%c0_17, %c0_18] : memref<32x32xbf16, #tpu.memory_space<vmem>>, vector<32x32xbf16>
    %cst_19 = arith.constant dense<0.000000e+00> : vector<8x32xf32>
    %17 = tpu.matmul %5, %16, %cst_19 {dimension_numbers = #tpu.dot_dimension_numbers<[1], [0], [0], [1], [0, 0, 1, 1], [], []>} : vector<8x32xbf16>, vector<32x32xbf16>, vector<8x32xf32> -> vector<8x32xf32>
    %c0_20 = arith.constant 0 : index
    %c0_21 = arith.constant 0 : index
    %18 = vector.load %arg10[%c0_20, %c0_21] : memref<1x32xf32, #tpu.memory_space<vmem>>, vector<1x32xf32>
    %19 = vector.broadcast %18 : vector<1x32xf32> to vector<8x32xf32>
    %20 = arith.addf %17, %19 : vector<8x32xf32>
    %cst_22 = arith.constant 0.353553385 : f32
    %21 = vector.broadcast %cst_22 : f32 to vector<8x32xf32>
    %22 = arith.mulf %10, %21 : vector<8x32xf32>
    %c0_23 = arith.constant 0 : index
    %c0_24 = arith.constant 0 : index
    %c0_25 = arith.constant 0 : index
    %23 = vector.load %arg4[%c0_23, %c0_24, %c0_25] : memref<1x1x8xf32, #tpu.memory_space<vmem>>, vector<1x1x8xf32>
    %cst_26 = arith.constant 0.000000e+00 : f32
    %24 = vector.broadcast %cst_26 : f32 to vector<1x1x8xf32>
    %25 = arith.cmpf ogt, %23, %24 : vector<1x1x8xf32>
    %cst_27 = arith.constant 0.000000e+00 : f32
    %cst_28 = arith.constant -1.000000e+09 : f32
    %26 = vector.broadcast %cst_27 : f32 to vector<1x1x8xf32>
    %27 = vector.broadcast %cst_28 : f32 to vector<1x1x8xf32>
    %28 = arith.select %25, %26, %27 : vector<1x1x8xi1>, vector<1x1x8xf32>
    %29 = vector.extract_strided_slice %22 {offsets = [0, 0], sizes = [8, 8], strides = [1, 1]} : vector<8x32xf32> to vector<8x8xf32>
    %30 = vector.shape_cast %29 : vector<8x8xf32> to vector<1x8x8xf32>
    %31 = arith.truncf %30 : vector<1x8x8xf32> to vector<1x8x8xbf16>
    %32 = vector.extract_strided_slice %15 {offsets = [0, 0], sizes = [8, 8], strides = [1, 1]} : vector<8x32xf32> to vector<8x8xf32>
    %33 = vector.shape_cast %32 : vector<8x8xf32> to vector<1x8x8xf32>
    %34 = arith.truncf %33 : vector<1x8x8xf32> to vector<1x8x8xbf16>
    %35 = vector.extract_strided_slice %20 {offsets = [0, 0], sizes = [8, 8], strides = [1, 1]} : vector<8x32xf32> to vector<8x8xf32>
    %36 = vector.shape_cast %35 : vector<8x8xf32> to vector<1x8x8xf32>
    %37 = arith.truncf %36 : vector<1x8x8xf32> to vector<1x8x8xbf16>
    "tpu.trace_start"() <{level = 10 : i32, message = "bqd,bkd->bqk"}> : () -> ()
    %cst_29 = arith.constant dense<0.000000e+00> : vector<1x8x8xf32>
    %38 = tpu.matmul %31, %34, %cst_29 {dimension_numbers = #tpu.dot_dimension_numbers<[2], [2], [1], [1], [0, 0, 0, 1, 1, 1], [0], [0]>} : vector<1x8x8xbf16>, vector<1x8x8xbf16>, vector<1x8x8xf32> -> vector<1x8x8xf32>
    "tpu.trace_stop"() : () -> ()
    %39 = vector.broadcast %28 : vector<1x1x8xf32> to vector<1x8x8xf32>
    %40 = arith.addf %38, %39 : vector<1x8x8xf32>
    %cst_30 = arith.constant dense<0xFF800000> : vector<1x8xf32>
    %41 = vector.multi_reduction <maximumf>, %40, %cst_30 [2] : vector<1x8x8xf32> to vector<1x8xf32>
    %42 = vector.shape_cast %41 : vector<1x8xf32> to vector<1x8x1xf32>
    %43 = vector.broadcast %42 : vector<1x8x1xf32> to vector<1x8x8xf32>
    %44 = arith.subf %40, %43 : vector<1x8x8xf32>
    %45 = math.exp %44 : vector<1x8x8xf32>
    %cst_31 = arith.constant dense<0.000000e+00> : vector<1x8xf32>
    %46 = vector.multi_reduction <add>, %45, %cst_31 [2] : vector<1x8x8xf32> to vector<1x8xf32>
    %47 = vector.shape_cast %46 : vector<1x8xf32> to vector<1x8x1xf32>
    %48 = tpu.reciprocal %47 {approx = true} : vector<1x8x1xf32> -> vector<1x8x1xf32>
    %49 = vector.broadcast %48 : vector<1x8x1xf32> to vector<1x8x8xf32>
    %50 = arith.mulf %45, %49 : vector<1x8x8xf32>
    %51 = arith.truncf %50 : vector<1x8x8xf32> to vector<1x8x8xbf16>
    "tpu.trace_start"() <{level = 10 : i32, message = "bqk,bkd->bqd"}> : () -> ()
    %cst_32 = arith.constant dense<0.000000e+00> : vector<1x8x8xf32>
    %52 = tpu.matmul %51, %37, %cst_32 {dimension_numbers = #tpu.dot_dimension_numbers<[2], [1], [1], [2], [0, 0, 0, 1, 1, 2], [0], [0]>} : vector<1x8x8xbf16>, vector<1x8x8xbf16>, vector<1x8x8xf32> -> vector<1x8x8xf32>
    "tpu.trace_stop"() : () -> ()
    %53 = vector.shape_cast %52 : vector<1x8x8xf32> to vector<8x8xf32>
    %c0_33 = arith.constant 0 : index
    %c0_34 = arith.constant 0 : index
    %54 = vector.load %arg14[%c0_33, %c0_34] : memref<8x32xf32, #tpu.memory_space<vmem>>, vector<8x8xf32>
    tpu.vector_store %arg14[%c0_33, %c0_34], %53 {strides = array<i32>} : memref<8x32xf32, #tpu.memory_space<vmem>>, vector<8x8xf32>,
    %55 = vector.extract_strided_slice %22 {offsets = [0, 8], sizes = [8, 8], strides = [1, 1]} : vector<8x32xf32> to vector<8x8xf32>
    %56 = vector.shape_cast %55 : vector<8x8xf32> to vector<1x8x8xf32>
    %57 = arith.truncf %56 : vector<1x8x8xf32> to vector<1x8x8xbf16>
    %58 = vector.extract_strided_slice %15 {offsets = [0, 8], sizes = [8, 8], strides = [1, 1]} : vector<8x32xf32> to vector<8x8xf32>
    %59 = vector.shape_cast %58 : vector<8x8xf32> to vector<1x8x8xf32>
    %60 = arith.truncf %59 : vector<1x8x8xf32> to vector<1x8x8xbf16>
    %61 = vector.extract_strided_slice %20 {offsets = [0, 8], sizes = [8, 8], strides = [1, 1]} : vector<8x32xf32> to vector<8x8xf32>
    %62 = vector.shape_cast %61 : vector<8x8xf32> to vector<1x8x8xf32>
    %63 = arith.truncf %62 : vector<1x8x8xf32> to vector<1x8x8xbf16>
    "tpu.trace_start"() <{level = 10 : i32, message = "bqd,bkd->bqk"}> : () -> ()
    %cst_35 = arith.constant dense<0.000000e+00> : vector<1x8x8xf32>
    %64 = tpu.matmul %57, %60, %cst_35 {dimension_numbers = #tpu.dot_dimension_numbers<[2], [2], [1], [1], [0, 0, 0, 1, 1, 1], [0], [0]>} : vector<1x8x8xbf16>, vector<1x8x8xbf16>, vector<1x8x8xf32> -> vector<1x8x8xf32>
    "tpu.trace_stop"() : () -> ()
    %65 = vector.broadcast %28 : vector<1x1x8xf32> to vector<1x8x8xf32>
    %66 = arith.addf %64, %65 : vector<1x8x8xf32>
    %cst_36 = arith.constant dense<0xFF800000> : vector<1x8xf32>
    %67 = vector.multi_reduction <maximumf>, %66, %cst_36 [2] : vector<1x8x8xf32> to vector<1x8xf32>
    %68 = vector.shape_cast %67 : vector<1x8xf32> to vector<1x8x1xf32>
    %69 = vector.broadcast %68 : vector<1x8x1xf32> to vector<1x8x8xf32>
    %70 = arith.subf %66, %69 : vector<1x8x8xf32>
    %71 = math.exp %70 : vector<1x8x8xf32>
    %cst_37 = arith.constant dense<0.000000e+00> : vector<1x8xf32>
    %72 = vector.multi_reduction <add>, %71, %cst_37 [2] : vector<1x8x8xf32> to vector<1x8xf32>
    %73 = vector.shape_cast %72 : vector<1x8xf32> to vector<1x8x1xf32>
    %74 = tpu.reciprocal %73 {approx = true} : vector<1x8x1xf32> -> vector<1x8x1xf32>
    %75 = vector.broadcast %74 : vector<1x8x1xf32> to vector<1x8x8xf32>
    %76 = arith.mulf %71, %75 : vector<1x8x8xf32>
    %77 = arith.truncf %76 : vector<1x8x8xf32> to vector<1x8x8xbf16>
    "tpu.trace_start"() <{level = 10 : i32, message = "bqk,bkd->bqd"}> : () -> ()
    %cst_38 = arith.constant dense<0.000000e+00> : vector<1x8x8xf32>
    %78 = tpu.matmul %77, %63, %cst_38 {dimension_numbers = #tpu.dot_dimension_numbers<[2], [1], [1], [2], [0, 0, 0, 1, 1, 2], [0], [0]>} : vector<1x8x8xbf16>, vector<1x8x8xbf16>, vector<1x8x8xf32> -> vector<1x8x8xf32>
    "tpu.trace_stop"() : () -> ()
    %79 = vector.shape_cast %78 : vector<1x8x8xf32> to vector<8x8xf32>
    %c0_39 = arith.constant 0 : index
    %c8 = arith.constant 8 : index
    %80 = vector.load %arg14[%c0_39, %c8] : memref<8x32xf32, #tpu.memory_space<vmem>>, vector<8x8xf32>
    tpu.vector_store %arg14[%c0_39, %c8], %79 {strides = array<i32>} : memref<8x32xf32, #tpu.memory_space<vmem>>, vector<8x8xf32>,
    %81 = vector.extract_strided_slice %22 {offsets = [0, 16], sizes = [8, 8], strides = [1, 1]} : vector<8x32xf32> to vector<8x8xf32>
    %82 = vector.shape_cast %81 : vector<8x8xf32> to vector<1x8x8xf32>
    %83 = arith.truncf %82 : vector<1x8x8xf32> to vector<1x8x8xbf16>
    %84 = vector.extract_strided_slice %15 {offsets = [0, 16], sizes = [8, 8], strides = [1, 1]} : vector<8x32xf32> to vector<8x8xf32>
    %85 = vector.shape_cast %84 : vector<8x8xf32> to vector<1x8x8xf32>
    %86 = arith.truncf %85 : vector<1x8x8xf32> to vector<1x8x8xbf16>
    %87 = vector.extract_strided_slice %20 {offsets = [0, 16], sizes = [8, 8], strides = [1, 1]} : vector<8x32xf32> to vector<8x8xf32>
    %88 = vector.shape_cast %87 : vector<8x8xf32> to vector<1x8x8xf32>
    %89 = arith.truncf %88 : vector<1x8x8xf32> to vector<1x8x8xbf16>
    "tpu.trace_start"() <{level = 10 : i32, message = "bqd,bkd->bqk"}> : () -> ()
    %cst_40 = arith.constant dense<0.000000e+00> : vector<1x8x8xf32>
    %90 = tpu.matmul %83, %86, %cst_40 {dimension_numbers = #tpu.dot_dimension_numbers<[2], [2], [1], [1], [0, 0, 0, 1, 1, 1], [0], [0]>} : vector<1x8x8xbf16>, vector<1x8x8xbf16>, vector<1x8x8xf32> -> vector<1x8x8xf32>
    "tpu.trace_stop"() : () -> ()
    %91 = vector.broadcast %28 : vector<1x1x8xf32> to vector<1x8x8xf32>
    %92 = arith.addf %90, %91 : vector<1x8x8xf32>
    %cst_41 = arith.constant dense<0xFF800000> : vector<1x8xf32>
    %93 = vector.multi_reduction <maximumf>, %92, %cst_41 [2] : vector<1x8x8xf32> to vector<1x8xf32>
    %94 = vector.shape_cast %93 : vector<1x8xf32> to vector<1x8x1xf32>
    %95 = vector.broadcast %94 : vector<1x8x1xf32> to vector<1x8x8xf32>
    %96 = arith.subf %92, %95 : vector<1x8x8xf32>
    %97 = math.exp %96 : vector<1x8x8xf32>
    %cst_42 = arith.constant dense<0.000000e+00> : vector<1x8xf32>
    %98 = vector.multi_reduction <add>, %97, %cst_42 [2] : vector<1x8x8xf32> to vector<1x8xf32>
    %99 = vector.shape_cast %98 : vector<1x8xf32> to vector<1x8x1xf32>
    %100 = tpu.reciprocal %99 {approx = true} : vector<1x8x1xf32> -> vector<1x8x1xf32>
    %101 = vector.broadcast %100 : vector<1x8x1xf32> to vector<1x8x8xf32>
    %102 = arith.mulf %97, %101 : vector<1x8x8xf32>
    %103 = arith.truncf %102 : vector<1x8x8xf32> to vector<1x8x8xbf16>
    "tpu.trace_start"() <{level = 10 : i32, message = "bqk,bkd->bqd"}> : () -> ()
    %cst_43 = arith.constant dense<0.000000e+00> : vector<1x8x8xf32>
    %104 = tpu.matmul %103, %89, %cst_43 {dimension_numbers = #tpu.dot_dimension_numbers<[2], [1], [1], [2], [0, 0, 0, 1, 1, 2], [0], [0]>} : vector<1x8x8xbf16>, vector<1x8x8xbf16>, vector<1x8x8xf32> -> vector<1x8x8xf32>
    "tpu.trace_stop"() : () -> ()
    %105 = vector.shape_cast %104 : vector<1x8x8xf32> to vector<8x8xf32>
    %c0_44 = arith.constant 0 : index
    %c16 = arith.constant 16 : index
    %106 = vector.load %arg14[%c0_44, %c16] : memref<8x32xf32, #tpu.memory_space<vmem>>, vector<8x8xf32>
    tpu.vector_store %arg14[%c0_44, %c16], %105 {strides = array<i32>} : memref<8x32xf32, #tpu.memory_space<vmem>>, vector<8x8xf32>,
    %107 = vector.extract_strided_slice %22 {offsets = [0, 24], sizes = [8, 8], strides = [1, 1]} : vector<8x32xf32> to vector<8x8xf32>
    %108 = vector.shape_cast %107 : vector<8x8xf32> to vector<1x8x8xf32>
    %109 = arith.truncf %108 : vector<1x8x8xf32> to vector<1x8x8xbf16>
    %110 = vector.extract_strided_slice %15 {offsets = [0, 24], sizes = [8, 8], strides = [1, 1]} : vector<8x32xf32> to vector<8x8xf32>
    %111 = vector.shape_cast %110 : vector<8x8xf32> to vector<1x8x8xf32>
    %112 = arith.truncf %111 : vector<1x8x8xf32> to vector<1x8x8xbf16>
    %113 = vector.extract_strided_slice %20 {offsets = [0, 24], sizes = [8, 8], strides = [1, 1]} : vector<8x32xf32> to vector<8x8xf32>
    %114 = vector.shape_cast %113 : vector<8x8xf32> to vector<1x8x8xf32>
    %115 = arith.truncf %114 : vector<1x8x8xf32> to vector<1x8x8xbf16>
    "tpu.trace_start"() <{level = 10 : i32, message = "bqd,bkd->bqk"}> : () -> ()
    %cst_45 = arith.constant dense<0.000000e+00> : vector<1x8x8xf32>
    %116 = tpu.matmul %109, %112, %cst_45 {dimension_numbers = #tpu.dot_dimension_numbers<[2], [2], [1], [1], [0, 0, 0, 1, 1, 1], [0], [0]>} : vector<1x8x8xbf16>, vector<1x8x8xbf16>, vector<1x8x8xf32> -> vector<1x8x8xf32>
    "tpu.trace_stop"() : () -> ()
    %117 = vector.broadcast %28 : vector<1x1x8xf32> to vector<1x8x8xf32>
    %118 = arith.addf %116, %117 : vector<1x8x8xf32>
    %cst_46 = arith.constant dense<0xFF800000> : vector<1x8xf32>
    %119 = vector.multi_reduction <maximumf>, %118, %cst_46 [2] : vector<1x8x8xf32> to vector<1x8xf32>
    %120 = vector.shape_cast %119 : vector<1x8xf32> to vector<1x8x1xf32>
    %121 = vector.broadcast %120 : vector<1x8x1xf32> to vector<1x8x8xf32>
    %122 = arith.subf %118, %121 : vector<1x8x8xf32>
    %123 = math.exp %122 : vector<1x8x8xf32>
    %cst_47 = arith.constant dense<0.000000e+00> : vector<1x8xf32>
    %124 = vector.multi_reduction <add>, %123, %cst_47 [2] : vector<1x8x8xf32> to vector<1x8xf32>
    %125 = vector.shape_cast %124 : vector<1x8xf32> to vector<1x8x1xf32>
    %126 = tpu.reciprocal %125 {approx = true} : vector<1x8x1xf32> -> vector<1x8x1xf32>
    %127 = vector.broadcast %126 : vector<1x8x1xf32> to vector<1x8x8xf32>
    %128 = arith.mulf %123, %127 : vector<1x8x8xf32>
    %129 = arith.truncf %128 : vector<1x8x8xf32> to vector<1x8x8xbf16>
    "tpu.trace_start"() <{level = 10 : i32, message = "bqk,bkd->bqd"}> : () -> ()
    %cst_48 = arith.constant dense<0.000000e+00> : vector<1x8x8xf32>
    %130 = tpu.matmul %129, %115, %cst_48 {dimension_numbers = #tpu.dot_dimension_numbers<[2], [1], [1], [2], [0, 0, 0, 1, 1, 2], [0], [0]>} : vector<1x8x8xbf16>, vector<1x8x8xbf16>, vector<1x8x8xf32> -> vector<1x8x8xf32>
    "tpu.trace_stop"() : () -> ()
    %131 = vector.shape_cast %130 : vector<1x8x8xf32> to vector<8x8xf32>
    %c0_49 = arith.constant 0 : index
    %c24 = arith.constant 24 : index
    %132 = vector.load %arg14[%c0_49, %c24] : memref<8x32xf32, #tpu.memory_space<vmem>>, vector<8x8xf32>
    tpu.vector_store %arg14[%c0_49, %c24], %131 {strides = array<i32>} : memref<8x32xf32, #tpu.memory_space<vmem>>, vector<8x8xf32>,
    %c0_50 = arith.constant 0 : index
    %c0_51 = arith.constant 0 : index
    %133 = vector.load %arg14[%c0_50, %c0_51] : memref<8x32xf32, #tpu.memory_space<vmem>>, vector<8x32xf32>
    %134 = arith.truncf %133 : vector<8x32xf32> to vector<8x32xbf16>
    %c0_52 = arith.constant 0 : index
    %c0_53 = arith.constant 0 : index
    %135 = vector.load %arg11[%c0_52, %c0_53] : memref<32x32xbf16, #tpu.memory_space<vmem>>, vector<32x32xbf16>
    %cst_54 = arith.constant dense<0.000000e+00> : vector<8x32xf32>
    %136 = tpu.matmul %134, %135, %cst_54 {dimension_numbers = #tpu.dot_dimension_numbers<[1], [0], [0], [1], [0, 0, 1, 1], [], []>} : vector<8x32xbf16>, vector<32x32xbf16>, vector<8x32xf32> -> vector<8x32xf32>
    %c0_55 = arith.constant 0 : index
    %c0_56 = arith.constant 0 : index
    %137 = vector.load %arg12[%c0_55, %c0_56] : memref<1x32xf32, #tpu.memory_space<vmem>>, vector<1x32xf32>
    %138 = vector.broadcast %137 : vector<1x32xf32> to vector<8x32xf32>
    %139 = arith.addf %136, %138 : vector<8x32xf32>
    %140 = vector.shape_cast %139 : vector<8x32xf32> to vector<1x8x32xf32>
    %c0_57 = arith.constant 0 : index
    %c0_58 = arith.constant 0 : index
    %c0_59 = arith.constant 0 : index
    %141 = vector.load %arg13[%c0_57, %c0_58, %c0_59] : memref<1x8x32xf32, #tpu.memory_space<vmem>>, vector<1x8x32xf32>
    tpu.vector_store %arg13[%c0_57, %c0_58, %c0_59], %140 {strides = array<i32>} : memref<1x8x32xf32, #tpu.memory_space<vmem>>, vector<1x8x32xf32>,
    return
  }
  func.func @transform_0(%arg0: i32) -> (i32, i32, i32) {
    %c0_i32 = arith.constant 0 : i32
    %c0_i32_0 = arith.constant 0 : i32
    %c0_i32_1 = arith.constant 0 : i32
    return %arg0, %c0_i32, %c0_i32_0 : i32, i32, i32
  }
  func.func @transform_1(%arg0: i32) -> (i32, i32, i32) {
    %c0_i32 = arith.constant 0 : i32
    %c0_i32_0 = arith.constant 0 : i32
    %c0_i32_1 = arith.constant 0 : i32
    return %arg0, %c0_i32, %c0_i32_0 : i32, i32, i32
  }
  func.func @transform_2(%arg0: i32) -> (i32, i32, i32) {
    %c0_i32 = arith.constant 0 : i32
    %c0_i32_0 = arith.constant 0 : i32
    %c0_i32_1 = arith.constant 0 : i32
    return %arg0, %c0_i32, %c0_i32_0 : i32, i32, i32
  }
  func.func @transform_3(%arg0: i32) -> (i32, i32, i32) {
    %c0_i32 = arith.constant 0 : i32
    %c0_i32_0 = arith.constant 0 : i32
    %c0_i32_1 = arith.constant 0 : i32
    return %arg0, %c0_i32, %c0_i32_0 : i32, i32, i32
  }
  func.func @transform_4(%arg0: i32) -> (i32, i32) {
    %c0_i32 = arith.constant 0 : i32
    %c0_i32_0 = arith.constant 0 : i32
    %c0_i32_1 = arith.constant 0 : i32
    return %c0_i32, %c0_i32_0 : i32, i32
  }
  func.func @transform_5(%arg0: i32) -> (i32, i32) {
    %c0_i32 = arith.constant 0 : i32
    %c0_i32_0 = arith.constant 0 : i32
    %c0_i32_1 = arith.constant 0 : i32
    return %c0_i32, %c0_i32_0 : i32, i32
  }
  func.func @transform_6(%arg0: i32) -> (i32, i32) {
    %c0_i32 = arith.constant 0 : i32
    %c0_i32_0 = arith.constant 0 : i32
    %c0_i32_1 = arith.constant 0 : i32
    return %c0_i32, %c0_i32_0 : i32, i32
  }
  func.func @transform_7(%arg0: i32) -> (i32, i32) {
    %c0_i32 = arith.constant 0 : i32
    %c0_i32_0 = arith.constant 0 : i32
    %c0_i32_1 = arith.constant 0 : i32
    return %c0_i32, %c0_i32_0 : i32, i32
  }
  func.func @transform_8(%arg0: i32) -> (i32, i32) {
    %c0_i32 = arith.constant 0 : i32
    %c0_i32_0 = arith.constant 0 : i32
    %c0_i32_1 = arith.constant 0 : i32
    return %c0_i32, %c0_i32_0 : i32, i32
  }
  func.func @transform_9(%arg0: i32) -> (i32, i32) {
    %c0_i32 = arith.constant 0 : i32
    %c0_i32_0 = arith.constant 0 : i32
    %c0_i32_1 = arith.constant 0 : i32
    return %c0_i32, %c0_i32_0 : i32, i32
  }
  func.func @transform_10(%arg0: i32) -> (i32, i32) {
    %c0_i32 = arith.constant 0 : i32
    %c0_i32_0 = arith.constant 0 : i32
    %c0_i32_1 = arith.constant 0 : i32
    return %c0_i32, %c0_i32_0 : i32, i32
  }
  func.func @transform_11(%arg0: i32) -> (i32, i32) {
    %c0_i32 = arith.constant 0 : i32
    %c0_i32_0 = arith.constant 0 : i32
    %c0_i32_1 = arith.constant 0 : i32
    return %c0_i32, %c0_i32_0 : i32, i32
  }
  func.func @transform_12(%arg0: i32) -> (i32, i32, i32) {
    %c0_i32 = arith.constant 0 : i32
    %c0_i32_0 = arith.constant 0 : i32
    %c0_i32_1 = arith.constant 0 : i32
    return %arg0, %c0_i32, %c0_i32_0 : i32, i32, i32
  }
}

</mosaic_0001>

<bundles_post_ra>
// kernel: tpu_custom_call.1
= control target key start
LH: loop header
LB: loop body
LE: loop exit
PB: predicated region body
PF: predicated region fallthrough
CT: control target
= control target key end

     0   :  { %s2649_s0 = inlined_call_operand.hbm [shape: bf16[2,8,32], index: 0, kind: input, shape index: {}]   ;;  %s2650_s1 = inlined_call_operand.hbm [shape: bf16[2,8,32], index: 1, kind: input, shape index: {}]   ;;  %s2651_s2 = inlined_call_operand.hbm [shape: bf16[2,8,32], index: 2, kind: input, shape index: {}]   ;;  %s2652_s3 = inlined_call_operand.vmem [shape: f32[2,1,8], index: 3, kind: input, shape index: {}]   ;;  %s2653_s4 = inlined_call_operand.hbm [shape: bf16[32,32], index: 4, kind: input, shape index: {}]   ;;  %s2654_s5 = inlined_call_operand.hbm [shape: f32[1,32], index: 5, kind: input, shape index: {}]   ;;  %s2655_s6 = inlined_call_operand.hbm [shape: bf16[32,32], index: 6, kind: input, shape index: {}]   ;;  %s2656_s7 = inlined_call_operand.hbm [shape: f32[1,32], index: 7, kind: input, shape index: {}]   ;;  %s2657_s8 = inlined_call_operand.hbm [shape: bf16[32,32], index: 8, kind: input, shape index: {}]   ;;  %s2658_s9 = inlined_call_operand.hbm [shape: f32[1,32], index: 9, kind: input, shape index: {}]   ;;  %s2659_s10 = inlined_call_operand.vmem [shape: bf16[32,32], index: 10, kind: input, shape index: {}]   ;;  %s2660_s11 = inlined_call_operand.vmem [shape: f32[1,32], index: 11, kind: input, shape index: {}]   ;;  %s2661_s12 = inlined_call_operand.hbm [shape: f32[2,8,32], index: 12, kind: output, shape index: {}]  }
   0x1   :  { %2682 = sst [smem:[#allocation31_spill]] %s2653_s4 }
   0x2   :  { %2683 = sst [smem:[#allocation32_spill]] %s2655_s6 }
   0x3   :  { %2684 = sst [smem:[#allocation33_spill]] %s2657_s8 }
   0x4   :  { %2685 = sst [smem:[#allocation34_spill]] %s2659_s10 }
   0x5   :  { %2686 = sst [smem:[#allocation35_spill]] %s2660_s11 }
   0x6   :  { %2687 = sst [smem:[#allocation36_spill]] %s2661_s12 }
   0x7   :  { %17 = vsyncpa [#allocation4], 0 }
   0x8   :  { %19 = vsyncpa [#allocation4 + $0x1], 0 }
   0x9   :  { %20 = vsyncpa [#allocation7], 0 }
   0xa   :  { %22 = vsyncpa [#allocation7 + $0x1], 0 }
   0xb   :  { %23 = vsyncpa [#allocation10], 0 }
   0xc   :  { %24 = vsyncpa [#allocation13], 0 }
   0xd   :  { %25 = vsyncpa [#allocation16], 0 }
   0xe   :  { %26 = vsyncpa [#allocation5], 0 }
   0xf   :  { %28 = vsyncpa [#allocation5 + $0x1], 0  ;;  %s2253_s21 = smov 0   ;;  %s2255_s22 = smov 0  }
  0x10   :  { %s2257_s23 = smov 0   ;;  %s2259_s24 = smov 0  }
  0x11 LB: > { %2688 = sst [smem:[#allocation25_spill]] %s2153_s21  ;;  %s2167_s25 = smov [#allocation9]   ;;  %s2165_s24 = sphi %s2259_s24, %s2727_s24   ;;  %s2161_s23 = sphi %s2257_s23, %s2731_s23   ;;  %s2157_s22 = sphi %s2255_s22, %s2730_s22   ;;  %s2153_s21 = sphi %s2253_s21, %s2729_s21  }
  0x12   : > { %2689 = sst [smem:[#allocation26_spill]] %s2165_s24  ;;  %s349_s26 = sshll.u32 %s2167_s25, 4  ;;  %s350_s26 = int_to_ptr.vmem [resolvable:$true] %s349_s26 }
  0x13   : > { %s2274_s27 = sadd.s32 4294967295, %s2165_s24   ;;  %p1532_p0 = scmp.ge.s32.totalorder %s2165_s24, 1 }
  0x14   : > { %p2670_p1 = scmp.eq.s32.totalorder %s2274_s27, 0  ;;  %p337_p2 = scmp.lt.s32.totalorder %s2165_s24, 3 }
  0x15   : > { %s2168_s29 = smov [#allocation12]   ;;  %s2169_s14 = smov [#allocation15]  }
  0x16   : > { %p2279_p3 = pnand %p1532_p0, %p337_p2  ;;  %s373_s30 = sshll.u32 %s2168_s29, 4  ;;  %s2292_s30 = int_to_ptr.vmem [resolvable:$true] %s373_s30 }
  0x17   : > { %s397_s15 = sshll.u32 %s2169_s14, 4  ;;  %s1856_s17 = scalar_lea.vmem %s350_s26, 256  ;;  %s2294_s15 = int_to_ptr.vmem [resolvable:$true] %s397_s15 }
  0x18   : > { %s2690_s28 = scalar_select %p2279_p3, 1, 0 }
  0x19   : > { %p1725_p5 = pneg %p2279_p3  ;;  %p1857_p8 = scmp.ne.s32.totalorder %s350_s26, %s1856_s17 }
  0x1a   : > { %p1864_p11 = scmp.lt.s32.totalorder %s350_s26, %s350_s26  ;;  %p1865_p12 = scmp.lt.s32.totalorder %s1856_s17, %s1856_s17 }
  0x1b   : > { %p2288_p6 = pnand %p1725_p5, %p2670_p1 }
  0x1c   : > { %p1866_p13 = por %p1865_p12, %p1864_p11 }
  0x1d   : > { %s2691_s13 = scalar_select %p2288_p6, 1, 0 }
  0x1e   : > { %p2298_p7 = pneg %p2288_p6 }
  0x20   : > { %s2692_s16 = scalar_select %p2298_p7, 1, 0 }
  0x21   : > { %p1859_p9 = pnand %p1857_p8, %p2298_p7 }
  0x23   : > { %p1860_p10 = pneg %p1859_p9 }
  0x25   : > { %p1867_p0 = pnand %p1866_p13, %p1860_p10 }
  0x27   : > { %1870 = shalt.err (!%p1867_p0)
}
  0x28   : > { %s2170_s18 = smov 64   ;;  %s2171_s19 = smov 4  }
  0x29   : > { %s2693_s4 = sld [smem:[#allocation31_spill]]  ;;  %s1882_s29 = scalar_lea.vmem %s2292_s30, 256 }
  0x2a   : > { %p1883_p2 = scmp.ne.s32.totalorder %s2292_s30, %s1882_s29  ;;  %p1890_p9 = scmp.lt.s32.totalorder %s2292_s30, %s2292_s30 }
  0x2b   : > { %p1891_p10 = scmp.lt.s32.totalorder %s1882_s29, %s1882_s29 }
  0x2c   : > { %p1885_p5 = pnand %p1883_p2, %p2298_p7 }
  0x2d   : > { %p1892_p11 = por %p1891_p10, %p1890_p9 }
  0x2e   : > { %p1886_p8 = pneg %p1885_p5 }
  0x2f   : > { %1728 = dma.hbm_to_vmem [thread:$0]  (!%p2288_p6), %s2693_s4, 256, %s350_s26, [#allocation10], %s2170_s18, %s2170_s18, %s2171_s19  }
  0x30   : > { %p1893_p12 = pnand %p1892_p11, %p1886_p8 }
  0x32   : > { %1896 = shalt.err (!%p1893_p12)
}
  0x33   : > { %s2694_s6 = sld [smem:[#allocation32_spill]]  ;;  %s1908_s26 = scalar_lea.vmem %s2294_s15, 256 }
  0x34   : > { %p1909_p13 = scmp.ne.s32.totalorder %s2294_s15, %s1908_s26  ;;  %p1916_p5 = scmp.lt.s32.totalorder %s2294_s15, %s2294_s15 }
  0x35   : > { %p1917_p8 = scmp.lt.s32.totalorder %s1908_s26, %s1908_s26 }
  0x36   : > { %p1911_p0 = pnand %p1909_p13, %p2298_p7 }
  0x37   : > { %p1918_p9 = por %p1917_p8, %p1916_p5 }
  0x38   : > { %p1912_p2 = pneg %p1911_p0 }
  0x39   : > { %1734 = dma.hbm_to_vmem [thread:$0]  (!%p2288_p6), %s2694_s6, 256, %s2292_s30, [#allocation13], %s2170_s18, %s2170_s18, %s2171_s19  }
  0x3a   : > { %p1919_p10 = pnand %p1918_p9, %p1912_p2 }
  0x3c   : > { %1922 = shalt.err (!%p1919_p10)
}
  0x3d   : > { %s2695_s8 = sld [smem:[#allocation33_spill]]  ;;  %s1531_s30 = sadd.s32 4294967294, %s2165_s24  }
  0x3e   : > { %s2335_s29 = sadd.s32 1, %s2165_s24   ;;  %s41_s14 = sadd.s32 1, %s2161_s23 }
  0x3f   : > { %2696 = sst [smem:[#allocation27_spill]] %s2335_s29  ;;  %s38_s17 = ssub.s32 %s2165_s24, %s2335_s29 }
  0x40   : > { %p48_p11 = scmp.ne.s32.totalorder %s2161_s23, %s2157_s22  ;;  %p39_p12 = scmp.eq.s32.totalorder %s38_s17, 0 }
  0x41   : > { %p49_p13 = scmp.eq.s32.totalorder %s2165_s24, 0  ;;  %p54_p0 = scmp.ne.s32.totalorder %s2157_s22, %s2153_s21 }
  0x42   : > { %p324_p2 = scmp.eq.s32.totalorder %s2274_s27, 1  ;;  %p330_p10 = scmp.eq.s32.totalorder %s1531_s30, 1 }
  0x43   : > { %1740 = dma.hbm_to_vmem [thread:$0]  (!%p2288_p6), %s2695_s8, 256, %s2294_s15, [#allocation16], %s2170_s18, %s2170_s18, %s2171_s19  }
  0x44   : > { %s2347_s26 = scalar_select %p39_p12, %s2161_s23, %s41_s14  }
  0x45   : > { %p50_p5 = por %p49_p13, %p48_p11  ;;  %p2351_p8 = por %p2670_p1, %p54_p0 }
  0x46   : > { %2697 = sst [smem:[#allocation28_spill]] %s2347_s26  ;;  %p2355_p9 = por %p324_p2, %p48_p11 }
  0x47   : > { %s2698_s15 = scalar_select %p2351_p8, 1, 0 }
  0x48   : > { %s2699_s18 = scalar_select %p2355_p9, 1, 0 }
  0x49   : > { %p1764_p4 = scmp.lt.s32.totalorder %s2165_s24, 2  ;;  %s2663_s19 = sand.u32 1, %s2161_s23  }
  0x4a   : > { %2700 = sst [smem:[#allocation29_spill]] %s2699_s18  ;;  %p2361_p3 = por %p330_p10, %p54_p0 }
  0x4b   : > { %s2367_s25 = sshll.u32 %s2663_s19, 2  ;;  %s2370_s14 = sshll.u32 %s2165_s24, 6 }
  0x4c   : > { %s2701_s20 = scalar_select %p2361_p3, 1, 0 }
  0x4d   : > { %p2372_p12 = pnand %p1764_p4, %p50_p5  ;;  %s446_s4 = sand.u32 1, %s2165_s24  }
  0x4e   : > { %2702 = sst [smem:[#allocation30_spill]] %s2701_s20  ;;  %s2381_s8 = scalar_lea.hbm %s2650_s1, %s2370_s14 }
  0x4f   : > { %s2703_s17 = scalar_select %p2372_p12, 1, 0 }
  0x50   : > { %s450_s19 = scalar_lea.vmem [#allocation6], %s2367_s25  ;;  %s2384_s29 = scalar_lea.sflag [#allocation7], %s446_s4 }
  0x51   : > { %s457_s26 = sshll.u32 %s450_s19, 4  ;;  %s1923_s20 = scalar_lea.hbm %s2381_s8, 64  ;;  %s458_s26 = int_to_ptr.vmem [resolvable:$true] %s457_s26 }
  0x52   : > { %p1924_p4 = scmp.ne.s32.totalorder %s2381_s8, %s1923_s20  ;;  %p2390_p11 = pneg %p2372_p12 }
  0x53   : > { %s1928_s24 = scalar_lea.hbm %s2650_s1, 128  ;;  %p1929_p2 = scmp.lt.s32.totalorder %s2381_s8, %s2650_s1 }
  0x54   : > { %p1926_p13 = pnand %p2390_p11, %p1924_p4  ;;  %p1930_p5 = scmp.lt.s32.totalorder %s1928_s24, %s1923_s20 }
  0x56   : > { %p1927_p0 = pneg %p1926_p13  ;;  %p1931_p10 = por %p1930_p5, %p1929_p2 }
  0x58   : > { %p1932_p1 = pnand %p1931_p10, %p1927_p0 }
  0x5a   : > { %1935 = shalt.err (!%p1932_p1)
}
  0x5b   : > { %s1936_s4 = scalar_lea.vmem %s458_s26, 64  ;;  %s2172_s11 = smov [#allocation6]  }
  0x5c   : > { %p1937_p3 = scmp.ne.s32.totalorder %s458_s26, %s1936_s4  ;;  %s1941_s18 = sshll.u32 %s2172_s11, 4  ;;  %s1942_s18 = int_to_ptr.vmem [resolvable:$false] %s1941_s18 }
  0x5d   : > { %s1943_s10 = scalar_lea.vmem %s1942_s18, 128  ;;  %p1944_p4 = scmp.lt.s32.totalorder %s458_s26, %s1942_s18 }
  0x5e   : > { %p1939_p9 = pnand %p1937_p3, %p2390_p11  ;;  %p1945_p13 = scmp.lt.s32.totalorder %s1943_s10, %s1936_s4 }
  0x60   : > { %p1940_p8 = pneg %p1939_p9  ;;  %p1946_p6 = por %p1945_p13, %p1944_p4 }
  0x62   : > { %p1947_p7 = pnand %p1946_p6, %p1940_p8 }
  0x64   : > { %1950 = shalt.err (!%p1947_p7)
}
  0x65   : > { %1750 = dma.hbm_to_vmem [thread:$0]  (!%p2372_p12), %s2381_s8, 64, %s458_s26, %s2384_s29  }
  0x66   : > { %s2173_s12 = smov [#allocation11]   ;;  %s2174_s20 = smov [#allocation14]  }
  0x67   : > { %s363_s24 = sshll.u32 %s2173_s12, 4  ;;  %s387_s6 = sshll.u32 %s2174_s20, 4  ;;  %s364_s24 = int_to_ptr.vmem [resolvable:$true] %s363_s24  ;;  %s388_s6 = int_to_ptr.vmem [resolvable:$true] %s387_s6 }
  0x68   : > { %s1962_s30 = scalar_lea.vmem %s364_s24, 16  ;;  %p2705_p3 = scmp.ne.s32.totalorder %s2692_s16, 0 }
  0x69   : > { %p1963_p1 = scmp.ne.s32.totalorder %s364_s24, %s1962_s30  ;;  %s1969_s10 = scalar_lea.vmem %s364_s24, 32 }
  0x6a   : > { %p1970_p2 = scmp.lt.s32.totalorder %s364_s24, %s364_s24  ;;  %p1971_p6 = scmp.lt.s32.totalorder %s1969_s10, %s1962_s30 }
  0x6b   : > { %p1965_p9 = pnand %p1963_p1, %p2705_p3 }
  0x6c   : > { %p1972_p7 = por %p1971_p6, %p1970_p2 }
  0x6d   : > { %p1966_p0 = pneg %p1965_p9 }
  0x6f   : > { %p1973_p8 = pnand %p1972_p7, %p1966_p0 }
  0x71   : > { %1976 = shalt.err (!%p1973_p8)
}
  0x72   : > { %p2706_p5 = scmp.ne.s32.totalorder %s2691_s13, 0  ;;  %s1988_s26 = scalar_lea.vmem %s388_s6, 16 }
  0x73   : > { %p1989_p10 = scmp.ne.s32.totalorder %s388_s6, %s1988_s26  ;;  %s1995_s18 = scalar_lea.vmem %s388_s6, 32 }
  0x74   : > { %1731 = dma.hbm_to_vmem [thread:$0]  (!%p2706_p5), %s2654_s5, 16, %s364_s24, [#allocation10]  }
  0x75   : > { %p1991_p4 = pnand %p1989_p10, %p2705_p3  ;;  %p1996_p1 = scmp.lt.s32.totalorder %s388_s6, %s388_s6 }
  0x76   : > { %p1997_p9 = scmp.lt.s32.totalorder %s1995_s18, %s1988_s26 }
  0x77   : > { %p1992_p13 = pneg %p1991_p4 }
  0x78   : > { %p1998_p12 = por %p1997_p9, %p1996_p1 }
  0x7a   : > { %p1999_p2 = pnand %p1998_p12, %p1992_p13 }
  0x7c   : > { %2002 = shalt.err (!%p1999_p2)
}
  0x7d   : > { %1737 = dma.hbm_to_vmem [thread:$0]  (!%p2706_p5), %s2656_s7, 16, %s388_s6, [#allocation13]  }
  0x7e   : > { %s2175_s12 = smov [#allocation17]  }
  0x7f   : > { %s411_s24 = sshll.u32 %s2175_s12, 4  ;;  %s412_s24 = int_to_ptr.vmem [resolvable:$true] %s411_s24 }
  0x80   : > { %s2014_s20 = scalar_lea.vmem %s412_s24, 16  ;;  %s2021_s30 = scalar_lea.vmem %s412_s24, 32 }
  0x81   : > { %p2015_p0 = scmp.ne.s32.totalorder %s412_s24, %s2014_s20  ;;  %p2022_p8 = scmp.lt.s32.totalorder %s412_s24, %s412_s24 }
  0x82   : > { %p2023_p10 = scmp.lt.s32.totalorder %s2021_s30, %s2014_s20 }
  0x83   : > { %p2017_p6 = pnand %p2015_p0, %p2705_p3 }
  0x84   : > { %p2024_p12 = por %p2023_p10, %p2022_p8 }
  0x85   : > { %p2018_p7 = pneg %p2017_p6 }
  0x87   : > { %p2025_p4 = pnand %p2024_p12, %p2018_p7 }
  0x89   : > { %2028 = shalt.err (!%p2025_p4)
}
  0x8a   : > { %1743 = dma.hbm_to_vmem [thread:$0]  (!%p2706_p5), %s2658_s9, 16, %s412_s24, [#allocation16]  }
  0x8b   : > { %s2434_s8 = scalar_lea.hbm %s2649_s0, %s2370_s14  ;;  %s432_s26 = scalar_lea.vmem [#allocation3], %s2367_s25 }
  0x8c   : > { %s439_s18 = sshll.u32 %s432_s26, 4  ;;  %s2707_s13 = sand.u32 1, %s2161_s23   ;;  %s440_s18 = int_to_ptr.vmem [resolvable:$true] %s439_s18 }
  0x8d   : > { %s429_s19 = scalar_lea.sflag [#allocation4], %s2707_s13  ;;  %s2029_s4 = scalar_lea.hbm %s2434_s8, 64 }
  0x8e   : > { %p2030_p3 = scmp.ne.s32.totalorder %s2434_s8, %s2029_s4  ;;  %s2034_s20 = scalar_lea.hbm %s2649_s0, 128 }
  0x8f   : > { %p2035_p5 = scmp.lt.s32.totalorder %s2434_s8, %s2649_s0  ;;  %p2036_p9 = scmp.lt.s32.totalorder %s2034_s20, %s2029_s4 }
  0x90   : > { %p2032_p13 = pnand %p2030_p3, %p2390_p11 }
  0x91   : > { %p2037_p2 = por %p2036_p9, %p2035_p5 }
  0x92   : > { %p2033_p1 = pneg %p2032_p13 }
  0x94   : > { %p2038_p0 = pnand %p2037_p2, %p2033_p1 }
  0x96   : > { %2041 = shalt.err (!%p2038_p0)
}
  0x97   : > { %s2042_s11 = scalar_lea.vmem %s440_s18, 64  ;;  %s2176_s6 = smov [#allocation3]  }
  0x98   : > { %p2043_p6 = scmp.ne.s32.totalorder %s440_s18, %s2042_s11  ;;  %s2047_s16 = sshll.u32 %s2176_s6, 4  ;;  %s2048_s16 = int_to_ptr.vmem [resolvable:$false] %s2047_s16 }
  0x99   : > { %s2049_s26 = scalar_lea.vmem %s2048_s16, 128  ;;  %p2050_p10 = scmp.lt.s32.totalorder %s440_s18, %s2048_s16 }
  0x9a   : > { %p2045_p7 = pnand %p2043_p6, %p2390_p11  ;;  %p2051_p12 = scmp.lt.s32.totalorder %s2049_s26, %s2042_s11 }
  0x9c   : > { %p2046_p8 = pneg %p2045_p7  ;;  %p2052_p4 = por %p2051_p12, %p2050_p10 }
  0x9e   : > { %p2053_p3 = pnand %p2052_p4, %p2046_p8 }
  0xa0   : > { %2056 = shalt.err (!%p2053_p3)
}
  0xa1   : > { %p2708_p13 = scmp.ne.s32.totalorder %s2703_s17, 0  ;;  %s473_s12 = scalar_lea.hbm %s2651_s2, %s2370_s14 }
  0xa2   : > { %s468_s24 = scalar_lea.vmem [#allocation8], %s2367_s25  ;;  %s2057_s30 = scalar_lea.hbm %s473_s12, 64 }
  0xa3   : > { %1747 = dma.hbm_to_vmem [thread:$0]  (!%p2708_p13), %s2434_s8, 64, %s440_s18, %s429_s19  }
  0xa4   : > { %s475_s20 = sshll.u32 %s468_s24, 4  ;;  %p2058_p1 = scmp.ne.s32.totalorder %s473_s12, %s2057_s30  ;;  %s476_s20 = int_to_ptr.vmem [resolvable:$true] %s475_s20 }
  0xa5   : > { %s2062_s6 = scalar_lea.hbm %s2651_s2, 128  ;;  %p2063_p2 = scmp.lt.s32.totalorder %s473_s12, %s2651_s2 }
  0xa6   : > { %p2060_p5 = pnand %p2058_p1, %p2390_p11  ;;  %p2064_p0 = scmp.lt.s32.totalorder %s2062_s6, %s2057_s30 }
  0xa8   : > { %p2061_p9 = pneg %p2060_p5  ;;  %p2065_p6 = por %p2064_p0, %p2063_p2 }
  0xaa   : > { %p2066_p7 = pnand %p2065_p6, %p2061_p9 }
  0xac   : > { %2069 = shalt.err (!%p2066_p7)
}
  0xad   : > { %s2070_s25 = scalar_lea.vmem %s476_s20, 64  ;;  %s2177_s14 = smov [#allocation8]  }
  0xae   : > { %p2071_p8 = scmp.ne.s32.totalorder %s476_s20, %s2070_s25  ;;  %s2075_s8 = sshll.u32 %s2177_s14, 4  ;;  %s2076_s8 = int_to_ptr.vmem [resolvable:$false] %s2075_s8 }
  0xaf   : > { %s2077_s18 = scalar_lea.vmem %s2076_s8, 128  ;;  %p2078_p4 = scmp.lt.s32.totalorder %s476_s20, %s2076_s8 }
  0xb0   : > { %p2073_p10 = pnand %p2071_p8, %p2390_p11  ;;  %p2079_p3 = scmp.lt.s32.totalorder %s2077_s18, %s2070_s25 }
  0xb2   : > { %p2074_p12 = pneg %p2073_p10  ;;  %p2080_p1 = por %p2079_p3, %p2078_p4 }
  0xb4   : > { %p2081_p5 = pnand %p2080_p1, %p2074_p12 }
  0xb6   : > { %2084 = shalt.err (!%p2081_p5)
}
  0xb7   : > { %1753 = dma.hbm_to_vmem [thread:$0]  (!%p2708_p13), %s473_s12, 64, %s476_s20, %s2384_s29  }
  0xb8   : > { %p2709_p9 = scmp.ne.s32.totalorder %s2690_s28, 0 }
  0xb9   : > { %s2476_s21 = sand.u32 (!%p2709_p9), 1, %s2157_s22   ;;  %p2710_p11 = scmp.ne.s32.totalorder (!%p2709_p9), %s2698_s15, 0 }
  0xba   : > { %490 = sbr.rel (%p2709_p9) target bundleno = 1587 (0x633), region = 68  ;;  %s2479_s19 = sshll.u32 (!%p2709_p9), %s2476_s21, 2 }
  0xbb   : > { %s493_s13 = scalar_lea.sflag (!%p2709_p9), [#allocation4], %s2476_s21  ;;  %s496_s4 = scalar_lea.vmem (!%p2709_p9), [#allocation3], %s2479_s19 }
  0xbf   : > { %2128 = dma.done.wait (%p2710_p11), %s493_s13, 64  }
  0xc0   : > { %2130 = vsyncadd (%p2710_p11), %s493_s13, 4294967232  ;;  %s501_s28 = sand.u32 1, %s2274_s27   ;;  %s505_s17 = scalar_lea.vmem [#allocation6], %s2479_s19 }
  0xc1   : > { %s502_s29 = scalar_lea.sflag [#allocation7], %s501_s28 }
  0xc2   : > { %2132 = dma.done.wait (%p2710_p11), %s502_s29, 128  }
  0xc3   : > { %2134 = vsyncadd (%p2710_p11), %s502_s29, 4294967168  ;;  %s514_s12 = scalar_lea.vmem [#allocation8], %s2479_s19  ;;  %p2711_p13 = scmp.eq.s32.totalorder %s2274_s27, 0 }
  0xc5   : > { %2136 = dma.done.wait (%p2711_p13), [#allocation10], 272   ;;  %p2712_p2 = pmov %p2711_p13 }
  0xc7   : > { %2138 = vsyncadd (%p2712_p2), [#allocation10], 4294967024  ;;  %p2713_p0 = pmov %p2712_p2 }
  0xc9   : > { %2140 = dma.done.wait (%p2713_p0), [#allocation13], 272   ;;  %p2714_p6 = pmov %p2713_p0 }
  0xca   : > { %p2715_p7 = pmov %p2713_p0 }
  0xcb   : > { %2142 = vsyncadd (%p2714_p6), [#allocation13], 4294967024 }
  0xcc   : > { %2144 = dma.done.wait (%p2715_p7), [#allocation16], 272   ;;  %p2716_p8 = pmov %p2713_p0 }
  0xcd   : > { %v2178_v0 = vmov 0.0   ;;  %vm2179_vm0 = vmmov 0   ;;  %v1821_v1 = vld [vmem:[#allocation9 + $0x8] sm:$0xff]   ;;  %v1822_v2 = vld [vmem:[#allocation12 + $0x8] sm:$0xff]   ;;  %v1824_v4 = vld [vmem:[#allocation12] sm:$0xff]   ;;  %vm622_vm1 = vcmask 261120   ;;  %v806_v35 = vlaneseq }
  0xce   : > { %2146 = vsyncadd (%p2716_p8), [#allocation16], 4294967024  ;;  %1613 = vmatprep.subr.bf16.mxu0 %v2178_v0  ;;  %1621 = vmatprep.subr.bf16.mxu1 %v2178_v0  ;;  %v1823_v3 = vld [vmem:[#allocation9] sm:$0xff]   ;;  %v596_v5 = vld [vmem:[%s496_s4] sm:$0xf]  ;;  %vm811_vm2 = vcmask 64512  }
  0xcf   : > { %1617 = vmatprep.mubr.msk.bf16.mxu0 %vm2179_vm0, %v2178_v0  ;;  %1625 = vmatprep.mubr.msk.bf16.mxu1 %vm2179_vm0, %v2178_v0  ;;  %v597_v6 = vld [vmem:[%s505_s17] sm:$0xf]  ;;  %v1561_v8 = vld [vmem:[#allocation14] ss:$0 sm:$0xff]  ;;  %s2180_s15 = smov 112   ;;  %s2181_s24 = smov 120  }
  0xd0   : > { %1614 = vmatpush3.bf16.msra.mxu0 %v1821_v1  ;;  %1622 = vmatpush3.bf16.msra.mxu1 %v1822_v2  ;;  %v1557_v7 = vld [vmem:[#allocation11] ss:$0 sm:$0xff]  ;;  %s2182_s20 = smov 104   ;;  %v1826_v24 = vld [vmem:[#allocation15] sm:$0xff]   ;;  %v598_v25 = vld [vmem:[%s514_s12] sm:$0xf] }
  0xd1   : > { %1615 = vmatprep.subr.bf16.mxu0 %v2178_v0  ;;  %1623 = vmatprep.subr.bf16.mxu1 %v2178_v0  ;;  %v1825_v23 = vld [vmem:[#allocation15 + $0x8] sm:$0xff]   ;;  %p592_p10 = scmp.lt.s32.totalorder %s2274_s27, 1  ;;  %v807_v37 = vshrl.u32 %v806_v35, 7  ;;  %v2183_v39 = vmov -1e+09   ;;  %vm873_vm4 = vcmask 1043456  }
  0xd2   : > { %v1565_v48 = vld [vmem:[#allocation17] ss:$0 sm:$0xff]  ;;  %s2184_s16 = smov 8   ;;  %s2717_s14 = sld [smem:[#allocation34_spill]]  ;;  %vm1035_vm5 = vcmask 130112   ;;  %vm1151_vm6 = vcmask 195712  }
  0xd3   : > { %s593_s30 = scalar_select %p592_p10, %s2274_s27, 1  ;;  %v808_v38 = vsub.s32 0, %v807_v37  ;;  %vm1267_vm7 = vcmask 261312  }
  0xd4   : > { %1616 = vmatpush3.bf16.msra.mxu0 %v1823_v3  ;;  %1624 = vmatpush3.bf16.msra.mxu1 %v1824_v4  ;;  %s2185_s19 = smov 16   ;;  %s2186_s13 = smov 24  }
  0xd5   : > { %1629 = vmatprep.subr.bf16.mxu0 %v2178_v0  ;;  %1637 = vmatprep.subr.bf16.mxu1 %v2178_v0  ;;  %s594_s6 = scalar_lea.vmem %s2652_s3, %s593_s30  ;;  %s2718_s4 = sld [smem:[#allocation29_spill]] }
  0xd6   : > { %v799_v36 = vld [vmem:[%s594_s6] sm:$0x1]  ;;  %s1556_s28 = sshll.u32 %s2476_s21, 3  ;;  %s2719_s12 = sld [smem:[#allocation35_spill]] }
  0xd7   : > { %1618 = vmatmul.mubr.msk.bf16.vlgmr.msra.gmra.mxu0 %vm622_vm1, %v596_v5  ;;  %1626 = vmatmul.mubr.msk.bf16.vlgmr.msra.gmra.mxu1 %vm622_vm1, %v597_v6  ;;  %vm800_vm3 = vcmp.gt.f32.partialorder %v799_v36, 0.0  ;;  %s2720_s11 = sld [smem:[#allocation36_spill]]  ;;  %s2187_s26 = smov [#allocation18]  }
  0xd8   : > { %1633 = vmatprep.mubr.msk.bf16.mxu0 %vm2179_vm0, %v2178_v0  ;;  %1639 = vmatprep.mubr.msk.bf16.mxu1 %vm2179_vm0, %v2178_v0  ;;  %v801_v40 = vsel %vm800_vm3, 0.0, %v2183_v39  ;;  %s2089_s25 = sshll.u32 %s2187_s26, 4  ;;  %s2090_s25 = int_to_ptr.vmem [resolvable:$false] %s2089_s25 }
  0xd9   : > { %1630 = vmatpush3.bf16.msra.mxu0 %v1825_v23  ;;  %v809_v41 = vrot.slane %v801_v40, %v808_v38  ;;  %s2091_s8 = scalar_lea.vmem %s2090_s25, 256 }
  0xda   : > { %1631 = vmatprep.subr.bf16.mxu0 %v2178_v0 }
  0xdb   : > { %p2721_p4 = scmp.ne.s32.totalorder %s2718_s4, 0 }
  0xdd   : > { %1632 = vmatpush3.bf16.msra.mxu0 %v1826_v24 }
  0xde   : > { %1643 = vmatprep.subr.bf16.mxu0 %v2178_v0 }
  0xe0   : > { %1634 = vmatmul.mubr.msk.bf16.vlgmr.msra.gmra.mxu0 %vm622_vm1, %v598_v25 }
  0xe1   : > { %1645 = vmatprep.mubr.msk.bf16.mxu0 %vm2179_vm0, %v2178_v0 }
 0x197   : > { %v660_v9 = vpop.f32.mrf.mxu0  ;;  %v726_v11 = vpop.f32.mrf.mxu1 }
 0x198   : > { %v661_v10 = vadd.f32 %v1557_v7, %v660_v9  ;;  %v727_v12 = vadd.f32 %v1561_v8, %v726_v11 }
 0x199   : > { %v1619_v13 = vpop.f32.mrf.mxu0  ;;  %v1627_v15 = vpop.f32.mrf.mxu1 }
 0x19a   : > { %v798_v14 = vmul.f32 0.35355338, %v661_v10  ;;  %v803_v16 = vpack.c.bf16 %v727_v12, %v727_v12 }
 0x19b   : > { %v663_v17 = vpop.f32.mrf.mxu0  ;;  %v729_v18 = vpop.f32.mrf.mxu1 }
 0x19c   : > { %v802_v19 = vpack.c.bf16 %v798_v14, %v798_v14  ;;  %1039 = vrot.lane.b32.xlu1 %v803_v16, %s2180_s15  ;;  %922 = vrot.lane.b32.xlu0 %v803_v16, %s2181_s24  ;;  %v816_v21 = vsel %vm811_vm2, %v803_v16, 0 }
 0x19d   : > { %v1620_v20 = vpop.f32.mrf.mxu0  ;;  %v1628_v22 = vpop.f32.mrf.mxu1  ;;  %1638 = vmatpush3.bf16.xpose.msra.mxu1 %v816_v21 }
 0x19e   : > { %1649 = vmatprep.subr.bf16.mxu1 %v2178_v0 }
 0x1a0   : > { %1037 = vrot.lane.b32.xlu1 %v802_v19, %s2180_s15  ;;  %919 = vrot.lane.b32.xlu0 %v802_v19, %s2181_s24  ;;  %v792_v49 = vpop.f32.mrf.mxu0 }
 0x1a1   : > { %v793_v50 = vadd.f32 %v1565_v48, %v792_v49 }
 0x1a2   : > { %v1635_v51 = vpop.f32.mrf.mxu0 }
 0x1a3   : > { %v804_v52 = vpack.c.bf16 %v793_v50, %v793_v50 }
 0x1a4   : > { %1153 = vrot.lane.b32.xlu1 %v802_v19, %s2182_s20  ;;  %1155 = vrot.lane.b32.xlu0 %v803_v16, %s2182_s20  ;;  %v795_v53 = vpop.f32.mrf.mxu0 }
 0x1a5   : > { %1640 = vmatmul.mubr.msk.bf16.vlgmr.msra.gmra.mxu1 %vm811_vm2, %v802_v19  ;;  %v875_v54 = vsel %vm873_vm4, %v804_v52, 0 }
 0x1a6   : > { %1651 = vmatprep.mubr.msk.bf16.mxu1 %vm2179_vm0, %v2178_v0  ;;  %v1636_v55 = vpop.f32.mrf.mxu0  ;;  %1644 = vmatpush3.bf16.msra.mxu0 %v875_v54 }
 0x1a7   : > { %1655 = vmatprep.subr.bf16.mxu0 %v2178_v0 }
 0x20e   : > { %v923_v26 = vpop.permute.xlu0 %922  ;;  %v1040_v28 = vpop.permute.xlu1 %1039 }
 0x20f   : > { %v928_v27 = vsel %vm811_vm2, %v923_v26, 0  ;;  %v1045_v30 = vsel %vm811_vm2, %v1040_v28, 0 }
 0x210   : > { %1650 = vmatpush3.bf16.xpose.msra.mxu1 %v928_v27 }
 0x211   : > { %1661 = vmatprep.subr.bf16.mxu1 %v2178_v0 }
 0x212   : > { %v920_v29 = vpop.permute.xlu0 %919  ;;  %v1038_v32 = vpop.permute.xlu1 %1037 }
 0x216   : > { %v1156_v31 = vpop.permute.xlu0 %1155  ;;  %v1154_v34 = vpop.permute.xlu1 %1153 }
 0x217   : > { %1652 = vmatmul.mubr.msk.bf16.vlgmr.msra.gmra.mxu1 %vm811_vm2, %v920_v29  ;;  %v1161_v33 = vsel %vm811_vm2, %v1156_v31, 0 }
 0x218   : > { %1662 = vmatpush3.bf16.xpose.msra.mxu1 %v1045_v30  ;;  %1663 = vmatprep.mubr.msk.bf16.mxu1 %vm2179_vm0, %v2178_v0 }
 0x219   : > { %1673 = vmatprep.subr.bf16.mxu1 %v2178_v0 }
 0x21f   : > { %1664 = vmatmul.mubr.msk.bf16.vlgmr.msra.gmra.mxu1 %vm811_vm2, %v1038_v32 }
 0x220   : > { %1674 = vmatpush3.bf16.xpose.msra.mxu1 %v1161_v33  ;;  %1675 = vmatprep.mubr.msk.bf16.mxu1 %vm2179_vm0, %v2178_v0 }
 0x221   : > { %1685 = vmatprep.subr.bf16.mxu1 %v2178_v0 }
 0x227   : > { %1676 = vmatmul.mubr.msk.bf16.vlgmr.msra.gmra.mxu1 %vm811_vm2, %v1154_v34 }
 0x228   : > { %1689 = vmatprep.mubr.msk.bf16.mxu1 %vm2179_vm0, %v2178_v0 }
 0x265   : > { %v852_v42 = vpop.f32.mrf.mxu1 }
 0x266   : > { %v853_v43 = vadd.f32 %v852_v42, %v809_v41 }
 0x267   : > { %v1641_v44 = vpop.f32.mrf.mxu1 }
 0x268   : > { %v858_v45 = vsel %vm811_vm2, %v853_v43, -inf }
 0x269   : > { %859 = vmax.xlane.f32.xlu0 %v858_v45  ;;  %v855_v46 = vpop.f32.mrf.mxu1 }
 0x26b   : > { %v1642_v47 = vpop.f32.mrf.mxu1 }
 0x2d7   : > { %v964_v56 = vpop.f32.mrf.mxu1 }
 0x2d8   : > { %v965_v57 = vadd.f32 %v964_v56, %v809_v41 }
 0x2d9   : > { %v1653_v58 = vpop.f32.mrf.mxu1 }
 0x2da   : > { %v970_v59 = vsel %vm811_vm2, %v965_v57, -inf }
 0x2db   : > { %971 = vmax.xlane.f32.xlu1 %v970_v59  ;;  %v967_v60 = vpop.f32.mrf.mxu1 }
 0x2dc   : > { %v1827_v60 = vld [vmem:[%s2717_s14 + $0x8] sm:$0xff]  }
 0x2dd   : > { %v1654_v61 = vpop.f32.mrf.mxu1  ;;  %1686 = vmatpush3.bf16.msra.mxu1 %v1827_v60 }
 0x2de   : > { %1687 = vmatprep.subr.bf16.mxu1 %v2178_v0 }
 0x2df   : > { %v1081_v62 = vpop.f32.mrf.mxu1 }
 0x2e0   : > { %v1082_v63 = vadd.f32 %v1081_v62, %v809_v41  ;;  %v1828_v62 = vld [vmem:[%s2717_s14] sm:$0xff]  }
 0x2e1   : > { %v1665_v1 = vpop.f32.mrf.mxu1  ;;  %1688 = vmatpush3.bf16.msra.mxu1 %v1828_v62 }
 0x2e2   : > { %v1087_v2 = vsel %vm811_vm2, %v1082_v63, -inf }
 0x2e3   : > { %1088 = vmax.xlane.f32.xlu0 %v1087_v2  ;;  %v1084_v3 = vpop.f32.mrf.mxu1 }
 0x2e5   : > { %v1666_v4 = vpop.f32.mrf.mxu1 }
 0x2e7   : > { %v1197_v5 = vpop.f32.mrf.mxu1 }
 0x2e8   : > { %v1198_v6 = vadd.f32 %v1197_v5, %v809_v41 }
 0x2e9   : > { %v1677_v7 = vpop.f32.mrf.mxu1 }
 0x2ea   : > { %v1203_v8 = vsel %vm811_vm2, %v1198_v6, -inf }
 0x2eb   : > { %1204 = vmax.xlane.f32.xlu0 %v1203_v8  ;;  %v1200_v9 = vpop.f32.mrf.mxu1 }
 0x2ed   : > { %v1678_v10 = vpop.f32.mrf.mxu1 }
 0x2f2   : > { %v860_v11 = vpop.xlane.xlu0 %859 }
 0x2f3   : > { %v861_v12 = vsub.f32 %v853_v43, %v860_v11 }
 0x2f5   : > { %v862_v13 = vmul.f32 1.442695, %v861_v12  ;;  %v1577_v12 = vld [vmem:[%s2719_s12] ss:$0 sm:$0xff] }
 0x2f7   : > { %1829 = vpow2.f32 %v862_v13 }
 0x304   : > { %v1830_v14 = vpop.eup %1829 }
 0x305   : > { %v864_v15 = vsel %vm811_vm2, %v1830_v14, 0.0 }
 0x306   : > { %865 = vadd.xlane.f32.xlu1 %v864_v15 }
 0x317   : > { %983 = vrot.lane.b32.xlu1 %v804_v52, %s2181_s24  ;;  %s591_s24 = scalar_lea.vmem [#allocation18], %s1556_s28 }
 0x364   : > { %v972_v16 = vpop.xlane.xlu1 %971 }
 0x365   : > { %v973_v17 = vsub.f32 %v965_v57, %v972_v16 }
 0x367   : > { %v974_v18 = vmul.f32 1.442695, %v973_v17 }
 0x369   : > { %1831 = vpow2.f32 %v974_v18 }
 0x36c   : > { %v1089_v19 = vpop.xlane.xlu0 %1088 }
 0x36d   : > { %v1090_v20 = vsub.f32 %v1082_v63, %v1089_v19 }
 0x36f   : > { %v1091_v21 = vmul.f32 1.442695, %v1090_v20 }
 0x371   : > { %1833 = vpow2.f32 %v1091_v21 }
 0x374   : > { %v1205_v22 = vpop.xlane.xlu0 %1204 }
 0x375   : > { %v1206_v23 = vsub.f32 %v1198_v6, %v1205_v22 }
 0x376   : > { %v1832_v24 = vpop.eup %1831 }
 0x377   : > { %v1207_v25 = vmul.f32 1.442695, %v1206_v23  ;;  %v976_v26 = vsel %vm811_vm2, %v1832_v24, 0.0 }
 0x378   : > { %977 = vadd.xlane.f32.xlu0 %v976_v26 }
 0x379   : > { %1835 = vpow2.f32 %v1207_v25 }
 0x37e   : > { %v1834_v27 = vpop.eup %1833 }
 0x37f   : > { %v1093_v28 = vsel %vm811_vm2, %v1834_v27, 0.0 }
 0x380   : > { %1094 = vadd.xlane.f32.xlu1 %v1093_v28 }
 0x386   : > { %v1836_v29 = vpop.eup %1835 }
 0x387   : > { %v1209_v30 = vsel %vm811_vm2, %v1836_v29, 0.0 }
 0x388   : > { %1210 = vadd.xlane.f32.xlu0 %v1209_v30 }
 0x38f   : > { %v866_v31 = vpop.xlane.xlu1 %865 }
 0x390   : > { %1837 = vrcp.f32 %v866_v31 }
 0x391   : > { %1215 = vrot.lane.b32.xlu1 %v804_v52, %s2182_s20  ;;  %s1352_s20 = sshll.u32 %s591_s24, 4  ;;  %s2607_s20 = int_to_ptr.vmem [resolvable:$true] %s1352_s20 }
 0x392   : > { %p2092_p5 = scmp.lt.s32.totalorder %s2607_s20, %s2090_s25 }
 0x393   : > { %v984_v33 = vpop.permute.xlu1 %983 }
 0x394   : > { %v989_v36 = vsel %vm873_vm4, %v984_v33, 0 }
 0x39d   : > { %v1838_v32 = vpop.eup %1837 }
 0x39e   : > { %1099 = vrot.lane.b32.xlu0 %v804_v52, %s2180_s15  ;;  %v868_v34 = vmul.f32 %v1838_v32, %v1830_v14  ;;  %s1582_s15 = sshll.u32 %s2274_s27, 7  ;;  %s2085_s27 = scalar_lea.vmem %s2607_s20, 128 }
 0x39f   : > { %s2605_s6 = scalar_lea.hbm %s2720_s11, %s1582_s15  ;;  %p2086_p12 = scmp.ne.s32.totalorder %s2607_s20, %s2085_s27 }
 0x3a0   : > { %v869_v35 = vpack.c.bf16 %v868_v34, %v868_v34  ;;  %p2093_p9 = scmp.lt.s32.totalorder %s2091_s8, %s2085_s27 }
 0x3a1   : > { %p2087_p3 = pnand %p2086_p12, %p2721_p4 }
 0x3a2   : > { %1646 = vmatmul.mubr.msk.bf16.vlgmr.msra.gmra.mxu0 %vm811_vm2, %v869_v35  ;;  %p2094_p11 = por %p2093_p9, %p2092_p5 }
 0x3a3   : > { %1656 = vmatpush3.bf16.msra.mxu0 %v989_v36  ;;  %1657 = vmatprep.mubr.msk.bf16.mxu0 %vm2179_vm0, %v2178_v0  ;;  %p2088_p1 = pneg %p2087_p3 }
 0x3a4   : > { %1667 = vmatprep.subr.bf16.mxu0 %v2178_v0 }
 0x3a5   : > { %p2095_p13 = pnand %p2094_p11, %p2088_p1 }
 0x401   : > { %v978_v37 = vpop.xlane.xlu0 %977 }
 0x402   : > { %1839 = vrcp.f32 %v978_v37 }
 0x409   : > { %v1095_v38 = vpop.xlane.xlu1 %1094 }
 0x40a   : > { %1841 = vrcp.f32 %v1095_v38 }
 0x40d   : > { %v1216_v47 = vpop.permute.xlu1 %1215 }
 0x40e   : > { %v1221_v49 = vsel %vm873_vm4, %v1216_v47, 0 }
 0x40f   : > { %v1840_v39 = vpop.eup %1839 }
 0x410   : > { %v980_v40 = vmul.f32 %v1840_v39, %v1832_v24 }
 0x411   : > { %v1211_v41 = vpop.xlane.xlu0 %1210 }
 0x412   : > { %1843 = vrcp.f32 %v1211_v41  ;;  %v981_v42 = vpack.c.bf16 %v980_v40, %v980_v40 }
 0x414   : > { %1658 = vmatmul.mubr.msk.bf16.vlgmr.msra.gmra.mxu0 %vm811_vm2, %v981_v42 }
 0x415   : > { %v1100_v43 = vpop.permute.xlu0 %1099  ;;  %1669 = vmatprep.mubr.msk.bf16.mxu0 %vm2179_vm0, %v2178_v0 }
 0x416   : > { %v1105_v44 = vsel %vm873_vm4, %v1100_v43, 0 }
 0x417   : > { %v1842_v45 = vpop.eup %1841  ;;  %1668 = vmatpush3.bf16.msra.mxu0 %v1105_v44 }
 0x418   : > { %1679 = vmatprep.subr.bf16.mxu0 %v2178_v0  ;;  %v1097_v46 = vmul.f32 %v1842_v45, %v1834_v27 }
 0x41a   : > { %v1098_v48 = vpack.c.bf16 %v1097_v46, %v1097_v46 }
 0x41c   : > { %1670 = vmatmul.mubr.msk.bf16.vlgmr.msra.gmra.mxu0 %vm811_vm2, %v1098_v48 }
 0x41d   : > { %1680 = vmatpush3.bf16.msra.mxu0 %v1221_v49  ;;  %1681 = vmatprep.mubr.msk.bf16.mxu0 %vm2179_vm0, %v2178_v0 }
 0x41f   : > { %v1844_v50 = vpop.eup %1843 }
 0x420   : > { %v1213_v51 = vmul.f32 %v1844_v50, %v1836_v29 }
 0x422   : > { %v1214_v52 = vpack.c.bf16 %v1213_v51, %v1213_v51 }
 0x424   : > { %1682 = vmatmul.mubr.msk.bf16.vlgmr.msra.gmra.mxu0 %vm811_vm2, %v1214_v52 }
 0x462   : > { %v911_v53 = vpop.f32.mrf.mxu0 }
 0x463   : > { %917 = vst.msk [vmem:[#allocation2] sm:$0xff] %vm811_vm2, %v911_v53 }
 0x464   : > { %v1647_v54 = vpop.f32.mrf.mxu0 }
 0x466   : > { %v914_v55 = vpop.f32.mrf.mxu0 }
 0x468   : > { %v1648_v56 = vpop.f32.mrf.mxu0 }
 0x4d4   : > { %v1025_v57 = vpop.f32.mrf.mxu0 }
 0x4d5   : > { %1032 = vrot.lane.b32.xlu1 %v1025_v57, %s2184_s16  ;;  %s1339_s16 = scalar_lea.sflag [#allocation5], %s2476_s21 }
 0x4d6   : > { %v1659_v58 = vpop.f32.mrf.mxu0 }
 0x4d8   : > { %v1028_v59 = vpop.f32.mrf.mxu0 }
 0x4da   : > { %v1660_v61 = vpop.f32.mrf.mxu0 }
 0x4dc   : > { %v1141_v63 = vpop.f32.mrf.mxu0 }
 0x4dd   : > { %1148 = vrot.lane.b32.xlu0 %v1141_v63, %s2185_s19 }
 0x4de   : > { %v1671_v1 = vpop.f32.mrf.mxu0 }
 0x4e0   : > { %v1144_v2 = vpop.f32.mrf.mxu0 }
 0x4e2   : > { %v1672_v3 = vpop.f32.mrf.mxu0 }
 0x4e4   : > { %v1257_v4 = vpop.f32.mrf.mxu0 }
 0x4e5   : > { %1264 = vrot.lane.b32.xlu1 %v1257_v4, %s2186_s13 }
 0x4e6   : > { %v1683_v5 = vpop.f32.mrf.mxu0 }
 0x4e8   : > { %v1260_v6 = vpop.f32.mrf.mxu0 }
 0x4ea   : > { %v1684_v7 = vpop.f32.mrf.mxu0 }
 0x547   : > { %v1033_v8 = vpop.permute.xlu1 %1032 }
 0x548   : > { %1036 = vst.msk [vmem:[#allocation2] sm:$0xff] %vm1035_vm5, %v1033_v8 }
 0x54f   : > { %v1149_v0 = vpop.permute.xlu0 %1148 }
 0x550   : > { %1152 = vst.msk [vmem:[#allocation2] sm:$0xff] %vm1151_vm6, %v1149_v0 }
 0x557   : > { %v1265_v9 = vpop.permute.xlu1 %1264 }
 0x558   : > { %1268 = vst.msk [vmem:[#allocation2] sm:$0xff] %vm1267_vm7, %v1265_v9 }
 0x55f   : > { %v1269_v10 = vld [vmem:[#allocation2] sm:$0xff] }
 0x560   : > { %v1270_v11 = vpack.c.bf16 %v1269_v10, %v1269_v10 }
 0x562   : > { %1690 = vmatmul.mubr.msk.bf16.vlgmr.msra.gmra.mxu1 %vm622_vm1, %v1270_v11 }
 0x622   : > { %v1331_v13 = vpop.f32.mrf.mxu1 }
 0x623   : > { %v1332_v14 = vadd.f32 %v1577_v12, %v1331_v13 }
 0x624   : > { %v1691_v15 = vpop.f32.mrf.mxu1 }
 0x625   : > { %1337 = vst.msk [vmem:[%s591_s24] sm:$0xff] %vm622_vm1, %v1332_v14 }
 0x626   : > { %v1334_v16 = vpop.f32.mrf.mxu1 }
 0x627   : > { %2098 = shalt.err (!%p2095_p13)
}
 0x628   : > { %s2099_s18 = scalar_lea.hbm %s2605_s6, 128  ;;  %s2103_s13 = scalar_lea.hbm %s2720_s11, 256 }
 0x629   : > { %p2100_p2 = scmp.ne.s32.totalorder %s2605_s6, %s2099_s18  ;;  %p2104_p7 = scmp.lt.s32.totalorder %s2605_s6, %s2720_s11 }
 0x62a   : > { %p2105_p8 = scmp.lt.s32.totalorder %s2103_s13, %s2099_s18 }
 0x62b   : > { %p2101_p0 = pnand %p2100_p2, %p2721_p4 }
 0x62c   : > { %p2106_p10 = por %p2105_p8, %p2104_p7 }
 0x62d   : > { %p2102_p6 = pneg %p2101_p0 }
 0x62f   : > { %p2107_p12 = pnand %p2106_p10, %p2102_p6 }
 0x631   : > { %2110 = shalt.err (!%p2107_p12)
}
 0x632   : > { %1723 = dma.vmem_to_hbm [thread:$0]  (%p2721_p4), %s2607_s20, 128, %s2605_s6, %s1339_s16   ;;  %v1692_v17 = vpop.f32.mrf.mxu1 }
 0x633 PF: > { %s2722_s17 = sld [smem:[#allocation25_spill]] }
 0x634   : > { %s2723_s12 = sld [smem:[#allocation30_spill]] }
 0x635   : > { %s2724_s15 = sld [smem:[#allocation26_spill]] }
 0x639   : > { %s1364_s24 = sand.u32 1, %s2722_s17  }
 0x63a   : > { %p2725_p3 = scmp.ne.s32.totalorder %s2723_s12, 0  ;;  %s1365_s30 = scalar_lea.sflag [#allocation5], %s1364_s24 }
 0x63b   : > { %p2726_p1 = scmp.ge.s32.totalorder %s2724_s15, 2 }
 0x63d   : > { %p1755_p5 = pnand %p2726_p1, %p2725_p3 }
 0x63f   : > { %p1756_p9 = pneg %p1755_p5 }
 0x641   : > { %2148 = dma.done.wait (%p1756_p9), %s1365_s30, 128  }
 0x642   : > { %2150 = vsyncadd (%p1756_p9), %s1365_s30, 4294967168  ;;  %s2727_s24 = sld [smem:[#allocation27_spill]]  ;;  %s2729_s21 = smov %s2157_s22 }
 0x643   : > { %s2728_s4 = sld [smem:[#allocation28_spill]]  ;;  %s2730_s22 = smov %s2161_s23 }
 0x648   : > { %p31_p11 = scmp.ge.s32.totalorder %s2727_s24, 4  }
 0x649   : > { %s2731_s23 = smov %s2728_s4 }
 0x64a   :  { %33 = sbr.rel (!%p31_p11) target bundleno = 17 (0x11), region = 164 }
 0x64f   :  { %1370 = vsyncpa [#allocation4], 1 }
 0x650   :  { %1372 = vsyncpa [#allocation4 + $0x1], 1 }
 0x651   :  { %1373 = vsyncpa [#allocation7], 1 }
 0x652   :  { %1375 = vsyncpa [#allocation7 + $0x1], 1 }
 0x653   :  { %1376 = vsyncpa [#allocation10], 1 }
 0x654   :  { %1377 = vsyncpa [#allocation13], 1 }
 0x655   :  { %1378 = vsyncpa [#allocation16], 1 }
 0x656   :  { %1379 = vsyncpa [#allocation5], 1 }
 0x657   :  { %1381 = vsyncpa [#allocation5 + $0x1], 1 }

</bundles_post_ra>
